<compile_context>
chip_gen: v5e
topology: v5e:2x2
jax: 0.10.0
libtpu: 0.0.40
codegen_flags: <defaults>
</compile_context>

<pallas_src>
import jax
import jax.numpy as jnp
from jax.experimental import pallas as pl
from jax.experimental.pallas import tpu as pltpu

# --- model "config" (small shapes consistent with the module) ---------------
VOCAB = 50            # len(config.ws)
PAD = 0               # config.ws.PAD
MAX_LEN = 8           # config.max_len
EMBED_DIM = 200       # embedding_dim
NUM_CLASSES = 2
FEAT = MAX_LEN * EMBED_DIM            # 1600 (logical, unpadded)

# --- padded kernel-side layout (alignment; zero padding is numerically free) -
VOCAB_PAD = 128                        # one-hot K per position (lane / MXU aligned)
K_TOTAL = MAX_LEN * VOCAB_PAD          # 1024: single fused contraction dim
CLASS_SUB = 8                          # class dim padded to an f32 sublane tile
LANE = 128


def _round_up(x, m):
    return ((x + m - 1) // m) * m


def imdb_kernel(ids_ref, fused_ref, b_ref, o_ref):
    """One batch tile, transposed so batch is the lane-dense N dim.

    ids_ref  : [MAX_LEN, TB] int32                     (streamed per grid step)
    fused_ref: [CLASS_SUB, MAX_LEN*VOCAB_PAD] bf16     (resident; emb@W folded offline)
    b_ref    : [NUM_CLASSES] f32 in SMEM               (bias scalars)
    o_ref    : [NUM_CLASSES, TB] f32                   (transposed log-probs)
    """
    seq_len, tb = ids_ref.shape
    vocab_pad = fused_ref.shape[1] // seq_len

    ids = ids_ref[...]                                              # [L, TB] int32
    vocab_iota = jax.lax.broadcasted_iota(jnp.int32, (seq_len, vocab_pad, 1), 1)
    one_hot = (ids[:, None, :] == vocab_iota).astype(jnp.bfloat16)  # [L, VP, TB]
    one_hot = one_hot.reshape(seq_len * vocab_pad, tb)              # [K_TOTAL, TB]

    # Single MXU matmul: K = 1024 (all positions concatenated), N = TB (all lanes
    # real batch rows), M = 8 (rows 0,1 are the real classes).  One-hot selection of
    # bf16 table rows with f32 accumulation is exact.
    logits = jnp.dot(fused_ref[...], one_hot,
                     preferred_element_type=jnp.float32)            # [CLASS_SUB, TB]

    l0 = logits[0:1, :] + b_ref[0]
    l1 = logits[1:2, :] + b_ref[1]
    m = jnp.maximum(l0, l1)
    lse = m + jnp.log(jnp.exp(l0 - m) + jnp.exp(l1 - m))            # [1, TB]
    o_ref[0:1, :] = (l0 - lse).astype(o_ref.dtype)
    o_ref[1:2, :] = (l1 - lse).astype(o_ref.dtype)


def prepare_params(emb_table, fc_w, fc_b):
    """Fold embedding @ fc offline, pad + cast into the kernel layout (done once).

    emb_table: [VOCAB, EMBED_DIM] f32
    fc_w     : [FEAT, NUM_CLASSES] f32  (x @ W layout, i.e. transpose of torch [out,in])
    fc_b     : [NUM_CLASSES] f32
    """
    w3 = fc_w.reshape(MAX_LEN, EMBED_DIM, NUM_CLASSES)              # row-major (l, d, c)
    # fused[l, v, c] = emb[v, :] @ w3[l, :, c]  -- exact fold of gather + linear (f32)
    fused = jnp.einsum('vd,ldc->lvc', emb_table, w3,
                       precision=jax.lax.Precision.HIGHEST)         # [L, VOCAB, C]
    fused_p = jnp.zeros((MAX_LEN, VOCAB_PAD, CLASS_SUB), jnp.float32)
    fused_p = fused_p.at[:, :VOCAB, :NUM_CLASSES].set(fused)
    # -> [CLASS_SUB, MAX_LEN*VOCAB_PAD]: classes on M/sublanes, positions concat on K.
    fused_k = jnp.transpose(fused_p, (2, 0, 1)).reshape(CLASS_SUB, K_TOTAL)
    fused_k = fused_k.astype(jnp.bfloat16)
    b_k = fc_b.astype(jnp.float32)                                  # SMEM scalars
    return fused_k, b_k


def _choose_tiling(batch, tb_max=1024):
    """Minimise batch padding; keep >=2 grid steps for v7x megacore when worthwhile."""
    batch = max(int(batch), 1)
    grid = pl.cdiv(batch, tb_max)
    if batch > 2 * LANE:
        grid = max(grid, 2)
    tb = _round_up(pl.cdiv(batch, grid), LANE)
    grid = pl.cdiv(batch, tb)
    return tb, grid, tb * grid


def imdb_forward(ids, fused_k, b_k, *, tb_max=1024):
    """Full ImdbMode forward. ids: [B, MAX_LEN] int -> [B, 2] f32 log-probs."""
    batch = ids.shape[0]
    tb, grid, b_pad = _choose_tiling(batch, tb_max)
    ids_t = jnp.transpose(ids.astype(jnp.int32))                    # [MAX_LEN, B]
    ids_t = jnp.pad(ids_t, ((0, 0), (0, b_pad - batch)))            # pad rows = PAD (0)

    out_t = pl.pallas_call(
        imdb_kernel,
        out_shape=jax.ShapeDtypeStruct((NUM_CLASSES, b_pad), jnp.float32),
        grid_spec=pl.GridSpec(
            grid=(grid,),
            in_specs=[
                # streamed per batch tile
                pl.BlockSpec((MAX_LEN, tb), lambda i: (0, i)),
                # resident fused table (constant block index -> stays in VMEM)
                pl.BlockSpec((CLASS_SUB, K_TOTAL), lambda i: (0, 0)),
                # bias scalars in SMEM
                pl.BlockSpec(memory_space=pltpu.MemorySpace.SMEM),
            ],
            out_specs=pl.BlockSpec((NUM_CLASSES, tb), lambda i: (0, i)),
        ),
        compiler_params=pltpu.CompilerParams(
            dimension_semantics=("parallel",),                      # v7x: 2 TCs shard batch
            vmem_limit_bytes=32 * 1024 * 1024,
        ),
    )(ids_t, fused_k, b_k)
    return jnp.transpose(out_t)[:batch]


if __name__ == "__main__":
    key = jax.random.PRNGKey(0)
    k_emb, k_w, k_b, k_ids = jax.random.split(key, 4)

    # Deterministic parameter init (module __init__ shapes).
    emb_table = 0.1 * jax.random.normal(k_emb, (VOCAB, EMBED_DIM), jnp.float32)
    emb_table = emb_table.at[PAD].set(0.0)                          # padding_idx row zero
    fc_w = 0.02 * jax.random.normal(k_w, (FEAT, NUM_CLASSES), jnp.float32)
    fc_b = 0.01 * jax.random.normal(k_b, (NUM_CLASSES,), jnp.float32)

    # Example input: [batch=2, max_len=8] token ids, with some PAD tokens.
    B = 2
    ids = jax.random.randint(k_ids, (B, MAX_LEN), 1, VOCAB, dtype=jnp.int32)
    ids = ids.at[:, -2:].set(PAD)

    fused_k, b_k = prepare_params(emb_table, fc_w, fc_b)
    out = imdb_forward(ids, fused_k, b_k)
    out = jax.block_until_ready(out)

    # --- silent sanity checks ------------------------------------------------
    # (1) tight: reference using the SAME bf16-rounded fused table (kernel semantics).
    fused_f = fused_k.astype(jnp.float32).reshape(CLASS_SUB, MAX_LEN, VOCAB_PAD)
    oh = jax.nn.one_hot(ids, VOCAB_PAD, dtype=jnp.float32)          # [B, L, VP]
    logits_ref = jnp.einsum('blv,clv->bc', oh, fused_f[:NUM_CLASSES],
                            precision=jax.lax.Precision.HIGHEST) + fc_b
    ref_fused = jax.nn.log_softmax(logits_ref, axis=-1)
    # (2) loose: original full-f32 module semantics (bf16 fold rounding only).
    x32 = jnp.take(emb_table, ids, axis=0).reshape(B, -1)
    ref32 = jax.nn.log_softmax(
        jnp.dot(x32, fc_w, precision=jax.lax.Precision.HIGHEST) + fc_b, axis=-1)

    assert out.shape == (B, NUM_CLASSES)
    assert jnp.allclose(out, ref_fused, atol=1e-4, rtol=1e-4)
    assert jnp.allclose(out, ref32, atol=2e-2, rtol=2e-2)

    print("KERNEL_OK")
</pallas_src>

<mosaic_0001>
module attributes {stable_mosaic.version = 11 : i64} {
  func.func @imdb_kernel(%arg0: i32, %arg1: memref<8x128xi32, #tpu.memory_space<vmem>>, %arg2: memref<8x1024xbf16, #tpu.memory_space<vmem>>, %arg3: memref<2xf32, #tpu.memory_space<smem>>, %arg4: memref<2x128xf32, #tpu.memory_space<vmem>>) attributes {dimension_semantics = [#tpu.dimension_semantics<parallel>], iteration_bounds = array<i64: 1>, scalar_prefetch = 0 : i64, scratch_operands = 0 : i64, tpu.core_type = #tpu.core_type<tc>, window_params = [{transform_indices = @transform_0, window_bounds = array<i64: 8, 128>}, {pipeline_mode = #tpu.pipeline_mode<synchronous>, transform_indices = @transform_1, window_bounds = array<i64: 8, 1024>}, {transform_indices = @transform_2, window_bounds = array<i64: 2>}, {transform_indices = @transform_3, window_bounds = array<i64: 2, 128>}]} {
    %c0 = arith.constant 0 : index
    %c0_0 = arith.constant 0 : index
    %0 = vector.load %arg1[%c0, %c0_0] : memref<8x128xi32, #tpu.memory_space<vmem>>, vector<8x128xi32>
    %1 = tpu.iota {dimensions = array<i32: 1>} : vector<8x128x1xi32>
    %2 = vector.shape_cast %0 : vector<8x128xi32> to vector<8x1x128xi32>
    %3 = vector.broadcast %2 : vector<8x1x128xi32> to vector<8x128x128xi32>
    %4 = vector.broadcast %1 : vector<8x128x1xi32> to vector<8x128x128xi32>
    %5 = arith.cmpi eq, %3, %4 : vector<8x128x128xi32>
    %6 = arith.extui %5 : vector<8x128x128xi1> to vector<8x128x128xi32>
    %7 = arith.sitofp %6 : vector<8x128x128xi32> to vector<8x128x128xf32>
    %8 = arith.truncf %7 : vector<8x128x128xf32> to vector<8x128x128xbf16>
    %9 = vector.shape_cast %8 : vector<8x128x128xbf16> to vector<1024x128xbf16>
    %c0_1 = arith.constant 0 : index
    %c0_2 = arith.constant 0 : index
    %10 = vector.load %arg2[%c0_1, %c0_2] : memref<8x1024xbf16, #tpu.memory_space<vmem>>, vector<8x1024xbf16>
    %cst = arith.constant dense<0.000000e+00> : vector<8x128xf32>
    %11 = tpu.matmul %10, %9, %cst {dimension_numbers = #tpu.dot_dimension_numbers<[1], [0], [0], [1], [0, 0, 1, 1], [], []>} : vector<8x1024xbf16>, vector<1024x128xbf16>, vector<8x128xf32> -> vector<8x128xf32>
    %12 = vector.extract_strided_slice %11 {offsets = [0, 0], sizes = [1, 128], strides = [1, 1]} : vector<8x128xf32> to vector<1x128xf32>
    %c0_3 = arith.constant 0 : index
    %13 = memref.load %arg3[%c0_3] : memref<2xf32, #tpu.memory_space<smem>>
    %14 = vector.broadcast %13 : f32 to vector<1x128xf32>
    %15 = arith.addf %12, %14 : vector<1x128xf32>
    %16 = vector.extract_strided_slice %11 {offsets = [1, 0], sizes = [1, 128], strides = [1, 1]} : vector<8x128xf32> to vector<1x128xf32>
    %c1 = arith.constant 1 : index
    %17 = memref.load %arg3[%c1] : memref<2xf32, #tpu.memory_space<smem>>
    %18 = vector.broadcast %17 : f32 to vector<1x128xf32>
    %19 = arith.addf %16, %18 : vector<1x128xf32>
    %20 = arith.maximumf %15, %19 : vector<1x128xf32>
    %21 = arith.subf %15, %20 : vector<1x128xf32>
    %22 = math.exp %21 : vector<1x128xf32>
    %23 = arith.subf %19, %20 : vector<1x128xf32>
    %24 = math.exp %23 : vector<1x128xf32>
    %25 = arith.addf %22, %24 : vector<1x128xf32>
    %26 = math.log %25 : vector<1x128xf32>
    %27 = arith.addf %20, %26 : vector<1x128xf32>
    %28 = arith.subf %15, %27 : vector<1x128xf32>
    %c0_4 = arith.constant 0 : index
    %c0_5 = arith.constant 0 : index
    %29 = vector.load %arg4[%c0_4, %c0_5] : memref<2x128xf32, #tpu.memory_space<vmem>>, vector<1x128xf32>
    tpu.vector_store %arg4[%c0_4, %c0_5], %28 {strides = array<i32>} : memref<2x128xf32, #tpu.memory_space<vmem>>, vector<1x128xf32>,
    %30 = arith.subf %19, %27 : vector<1x128xf32>
    %c1_6 = arith.constant 1 : index
    %c0_7 = arith.constant 0 : index
    %31 = vector.load %arg4[%c1_6, %c0_7] : memref<2x128xf32, #tpu.memory_space<vmem>>, vector<1x128xf32>
    tpu.vector_store %arg4[%c1_6, %c0_7], %30 {strides = array<i32>} : memref<2x128xf32, #tpu.memory_space<vmem>>, vector<1x128xf32>,
    return
  }
  func.func @transform_0(%arg0: i32) -> (i32, i32) {
    %c0_i32 = arith.constant 0 : i32
    %c0_i32_0 = arith.constant 0 : i32
    return %c0_i32, %arg0 : i32, i32
  }
  func.func @transform_1(%arg0: i32) -> (i32, i32) {
    %c0_i32 = arith.constant 0 : i32
    %c0_i32_0 = arith.constant 0 : i32
    %c0_i32_1 = arith.constant 0 : i32
    return %c0_i32, %c0_i32_0 : i32, i32
  }
  func.func @transform_2(%arg0: i32) -> i32 {
    %c0_i32 = arith.constant 0 : i32
    %c0_i32_0 = arith.constant 0 : i32
    return %c0_i32 : i32
  }
  func.func @transform_3(%arg0: i32) -> (i32, i32) {
    %c0_i32 = arith.constant 0 : i32
    %c0_i32_0 = arith.constant 0 : i32
    return %c0_i32, %arg0 : i32, i32
  }
}

</mosaic_0001>

<bundles_post_ra>
// kernel: tpu_custom_call.1
= control target key start
LH: loop header
LB: loop body
LE: loop exit
PB: predicated region body
PF: predicated region fallthrough
CT: control target
= control target key end

     0   :  { %8 = vsyncpa [#allocation3], 0  ;;  %s1906_s0 = inlined_call_operand.hbm [shape: s32[8,128], index: 0, kind: input, shape index: {}]   ;;  %s1907_s1 = inlined_call_operand.hbm [shape: bf16[8,1024], index: 1, kind: input, shape index: {}]   ;;  %s1908_s2 = inlined_call_operand.vmem [shape: f32[2], index: 2, kind: input, shape index: {}]   ;;  %s1909_s3 = inlined_call_operand.hbm [shape: f32[2,128], index: 3, kind: output, shape index: {}]  }
   0x1   :  { %9 = vsyncpa [#allocation7], 0 }
   0x2   :  { %10 = vsyncpa [#allocation5], 0 }
   0x3   :  { %11 = vsyncpa [#allocation4], 0  ;;  %s17_s14 = sshll.u32 %s1906_s0, 4  ;;  %s1405_s15 = smov [#allocation2]   ;;  %s18_s14 = int_to_ptr.hbm [resolvable:$true] %s17_s14 }
   0x4   :  { %s19_s16 = sshll.u32 %s1405_s15, 4  ;;  %s28_s19 = sshll.u32 %s1907_s1, 4  ;;  %s20_s16 = int_to_ptr.vmem [resolvable:$true] %s19_s16  ;;  %s29_s19 = int_to_ptr.hbm [resolvable:$true] %s28_s19 }
   0x5   :  { %22 = dma.hbm_to_vmem [thread:$0]  %s18_s14, 128, %s20_s16, [#allocation3]  }
   0x6   :  { %s1406_s20 = smov [#allocation6]   ;;  %s39_s24 = sshll.u32 %s1908_s2, 4  ;;  %s40_s24 = int_to_ptr.vmem [resolvable:$true] %s39_s24 }
   0x7   :  { %s30_s21 = sshll.u32 %s1406_s20, 4  ;;  %s1407_s0 = smov [#allocation8]   ;;  %s31_s21 = int_to_ptr.vmem [resolvable:$true] %s30_s21 }
   0x8   :  { %33 = dma.hbm_to_vmem [thread:$0]  %s29_s19, 512, %s31_s21, [#allocation7]  }
   0x9   :  { %42 = dma.vmem_to_smem %s40_s24, 16, %s1407_s0, [#allocation5]  }
   0xa   :  { %1397 = dma.done.wait [#allocation3], 128  }
   0xb   :  { %1398 = vsyncadd [#allocation3], 4294967168 }
   0xc   :  { %1399 = dma.done.wait [#allocation7], 512  }
   0xd   :  { %1400 = vsyncadd [#allocation7], 4294966784 }
   0xe   :  { %1401 = dma.done.wait [#allocation5], 16  }
   0xf   :  { %1402 = vsyncadd [#allocation5], 4294967280 }
  0x10   :  { %55 = sfence }
  0x11   :  { %v1439_v0 = vld [vmem:[#allocation2] sm:$0xff]  ;;  %v57_v1 = vlaneseq  ;;  %v1408_v18 = vmov 0.0   ;;  %s1301_s1 = sld [smem:[#allocation8 + $0x1]]  ;;  %s1409_s25 = smov [#allocation9]  }
  0x12   :  { %v74_v2 = vrot.slane %v1439_v0, 1  ;;  %v75_v3 = vrot.slane %v1439_v0, 2  ;;  %v76_v4 = vrot.slane %v1439_v0, 3  ;;  %v1447_v6 = vperm.slane %v1439_v0, 0  ;;  %s1121_s2 = sld [smem:[#allocation8]]  ;;  %s1159_s26 = sshll.u32 %s1409_s25, 4  ;;  %s1160_s26 = int_to_ptr.vmem [resolvable:$true] %s1159_s26 }
  0x13   :  { %v1444_v5 = vshrl.u32 %v57_v1, 7  ;;  %s1161_s29 = sshll.u32 %s1909_s3, 4  ;;  %s1162_s29 = int_to_ptr.hbm [resolvable:$true] %s1161_s29 }
  0x14   :  { %v1449_v7 = vperm.slane %v74_v2, 0  ;;  %v1451_v8 = vperm.slane %v75_v3, 0  ;;  %v1453_v9 = vperm.slane %v76_v4, 0 }
  0x15   :  { %v1456_v10 = vadd.s32 112, %v1444_v5  ;;  %v1459_v11 = vadd.s32 120, %v1444_v5  ;;  %v1462_v12 = vadd.s32 96, %v1444_v5  ;;  %v1465_v13 = vadd.s32 104, %v1444_v5 }
  0x16   :  { %v1468_v14 = vadd.s32 80, %v1444_v5  ;;  %v1471_v15 = vadd.s32 88, %v1444_v5  ;;  %v1474_v16 = vadd.s32 64, %v1444_v5  ;;  %v1477_v17 = vadd.s32 72, %v1444_v5 }
  0x17   :  { %vm103_vm0 = vcmp.eq.s32.totalorder %v1447_v6, %v1456_v10  ;;  %vm104_vm1 = vcmp.eq.s32.totalorder %v1447_v6, %v1459_v11  ;;  %vm119_vm2 = vcmp.eq.s32.totalorder %v1449_v7, %v1456_v10  ;;  %vm120_vm3 = vcmp.eq.s32.totalorder %v1449_v7, %v1459_v11 }
  0x18   :  { %v1187_v19 = vsel %vm103_vm0, 1.0, %v1408_v18  ;;  %v1188_v20 = vsel %vm104_vm1, 1.0, %v1408_v18  ;;  %v1203_v21 = vsel %vm119_vm2, 1.0, %v1408_v18  ;;  %v1204_v22 = vsel %vm120_vm3, 1.0, %v1408_v18 }
  0x19   :  { %v487_v23 = vpack.c.bf16 %v1187_v19, %v1187_v19  ;;  %v488_v24 = vpack.c.bf16 %v1188_v20, %v1188_v20  ;;  %v503_v25 = vpack.c.bf16 %v1203_v21, %v1203_v21  ;;  %v504_v26 = vpack.c.bf16 %v1204_v22, %v1204_v22 }
  0x1a   :  { %vm135_vm4 = vcmp.eq.s32.totalorder %v1451_v8, %v1456_v10  ;;  %vm136_vm5 = vcmp.eq.s32.totalorder %v1451_v8, %v1459_v11  ;;  %vm151_vm6 = vcmp.eq.s32.totalorder %v1453_v9, %v1456_v10  ;;  %vm152_vm7 = vcmp.eq.s32.totalorder %v1453_v9, %v1459_v11 }
  0x1b   :  { %v775_v27 = vunpack.c.l.b16 %v487_v23  ;;  %v776_v28 = vunpack.c.l.b16 %v488_v24  ;;  %v791_v29 = vunpack.c.l.b16 %v503_v25  ;;  %v792_v30 = vunpack.c.l.b16 %v504_v26 }
  0x1c   :  { %v1219_v31 = vsel %vm135_vm4, 1.0, %v1408_v18  ;;  %v1220_v32 = vsel %vm136_vm5, 1.0, %v1408_v18  ;;  %v1235_v33 = vsel %vm151_vm6, 1.0, %v1408_v18  ;;  %v1236_v34 = vsel %vm152_vm7, 1.0, %v1408_v18 }
  0x1d   :  { %v896_v35 = vpack.c.b16 %v776_v28, %v775_v27  ;;  %v904_v36 = vpack.c.b16 %v792_v30, %v791_v29  ;;  %v519_v37 = vpack.c.bf16 %v1219_v31, %v1219_v31  ;;  %v520_v38 = vpack.c.bf16 %v1220_v32, %v1220_v32 }
  0x1e   :  { %v535_v39 = vpack.c.bf16 %v1235_v33, %v1235_v33  ;;  %v536_v40 = vpack.c.bf16 %v1236_v34, %v1236_v34  ;;  %vm101_vm8 = vcmp.eq.s32.totalorder %v1447_v6, %v1462_v12  ;;  %vm102_vm9 = vcmp.eq.s32.totalorder %v1447_v6, %v1465_v13 }
  0x1f   :  { %1017 = vmatpush.bf16.msra.mxu0 %v896_v35  ;;  %1030 = vmatpush.bf16.msra.mxu1 %v904_v36  ;;  %v807_v41 = vunpack.c.l.b16 %v519_v37  ;;  %v808_v42 = vunpack.c.l.b16 %v520_v38  ;;  %v1185_v43 = vsel %vm101_vm8, 1.0, %v1408_v18  ;;  %v1186_v44 = vsel %vm102_vm9, 1.0, %v1408_v18 }
  0x20   :  { %v823_v45 = vunpack.c.l.b16 %v535_v39  ;;  %v824_v46 = vunpack.c.l.b16 %v536_v40  ;;  %v485_v47 = vpack.c.bf16 %v1185_v43, %v1185_v43  ;;  %v486_v48 = vpack.c.bf16 %v1186_v44, %v1186_v44 }
  0x21   :  { %v912_v49 = vpack.c.b16 %v808_v42, %v807_v41  ;;  %vm117_vm10 = vcmp.eq.s32.totalorder %v1449_v7, %v1462_v12  ;;  %vm118_vm11 = vcmp.eq.s32.totalorder %v1449_v7, %v1465_v13  ;;  %vm133_vm12 = vcmp.eq.s32.totalorder %v1451_v8, %v1462_v12 }
  0x22   :  { %v920_v50 = vpack.c.b16 %v824_v46, %v823_v45  ;;  %v773_v51 = vunpack.c.l.b16 %v485_v47  ;;  %v774_v52 = vunpack.c.l.b16 %v486_v48  ;;  %v1201_v53 = vsel %vm117_vm10, 1.0, %v1408_v18 }
  0x23   :  { %1043 = vmatpush.bf16.msra.mxu2 %v912_v49  ;;  %v1202_v54 = vsel %vm118_vm11, 1.0, %v1408_v18  ;;  %v501_v55 = vpack.c.bf16 %v1201_v53, %v1201_v53  ;;  %vm134_vm13 = vcmp.eq.s32.totalorder %v1451_v8, %v1465_v13  ;;  %v1217_v56 = vsel %vm133_vm12, 1.0, %v1408_v18 }
  0x24   :  { %1056 = vmatpush.bf16.msra.mxu3 %v920_v50  ;;  %v895_v57 = vpack.c.b16 %v774_v52, %v773_v51  ;;  %v502_v58 = vpack.c.bf16 %v1202_v54, %v1202_v54  ;;  %v1218_v59 = vsel %vm134_vm13, 1.0, %v1408_v18  ;;  %v517_v60 = vpack.c.bf16 %v1217_v56, %v1217_v56 }
  0x25   :  { %v789_v61 = vunpack.c.l.b16 %v501_v55  ;;  %v518_v62 = vpack.c.bf16 %v1218_v59, %v1218_v59  ;;  %vm149_vm14 = vcmp.eq.s32.totalorder %v1453_v9, %v1462_v12  ;;  %vm150_vm15 = vcmp.eq.s32.totalorder %v1453_v9, %v1465_v13 }
  0x26   :  { %1018 = vmatpush.bf16.msra.mxu0 %v895_v57  ;;  %v790_v63 = vunpack.c.l.b16 %v502_v58  ;;  %v805_v1 = vunpack.c.l.b16 %v517_v60  ;;  %v1233_v2 = vsel %vm149_vm14, 1.0, %v1408_v18  ;;  %v1234_v3 = vsel %vm150_vm15, 1.0, %v1408_v18 }
  0x27   :  { %v806_v4 = vunpack.c.l.b16 %v518_v62  ;;  %v533_v19 = vpack.c.bf16 %v1233_v2, %v1233_v2  ;;  %v534_v20 = vpack.c.bf16 %v1234_v3, %v1234_v3  ;;  %vm99_vm0 = vcmp.eq.s32.totalorder %v1447_v6, %v1468_v14 }
  0x28   :  { %v903_v21 = vpack.c.b16 %v790_v63, %v789_v61  ;;  %vm100_vm1 = vcmp.eq.s32.totalorder %v1447_v6, %v1471_v15  ;;  %v1183_v22 = vsel %vm99_vm0, 1.0, %v1408_v18  ;;  %vm115_vm2 = vcmp.eq.s32.totalorder %v1449_v7, %v1468_v14 }
  0x29   :  { %v911_v23 = vpack.c.b16 %v806_v4, %v805_v1  ;;  %v821_v24 = vunpack.c.l.b16 %v533_v19  ;;  %v822_v25 = vunpack.c.l.b16 %v534_v20  ;;  %v1184_v26 = vsel %vm100_vm1, 1.0, %v1408_v18 }
  0x2a   :  { %1031 = vmatpush.bf16.msra.mxu1 %v903_v21  ;;  %v483_v27 = vpack.c.bf16 %v1183_v22, %v1183_v22  ;;  %v484_v28 = vpack.c.bf16 %v1184_v26, %v1184_v26  ;;  %vm116_vm3 = vcmp.eq.s32.totalorder %v1449_v7, %v1471_v15  ;;  %v1199_v29 = vsel %vm115_vm2, 1.0, %v1408_v18 }
  0x2b   :  { %1044 = vmatpush.bf16.msra.mxu2 %v911_v23  ;;  %v919_v30 = vpack.c.b16 %v822_v25, %v821_v24  ;;  %v1200_v31 = vsel %vm116_vm3, 1.0, %v1408_v18  ;;  %v499_v32 = vpack.c.bf16 %v1199_v29, %v1199_v29  ;;  %vm131_vm4 = vcmp.eq.s32.totalorder %v1451_v8, %v1468_v14 }
  0x2c   :  { %v771_v33 = vunpack.c.l.b16 %v483_v27  ;;  %v772_v34 = vunpack.c.l.b16 %v484_v28  ;;  %v500_v35 = vpack.c.bf16 %v1200_v31, %v1200_v31  ;;  %vm132_vm5 = vcmp.eq.s32.totalorder %v1451_v8, %v1471_v15 }
  0x2d   :  { %1057 = vmatpush.bf16.msra.mxu3 %v919_v30  ;;  %v787_v36 = vunpack.c.l.b16 %v499_v32  ;;  %v1215_v37 = vsel %vm131_vm4, 1.0, %v1408_v18  ;;  %v1216_v38 = vsel %vm132_vm5, 1.0, %v1408_v18  ;;  %vm147_vm6 = vcmp.eq.s32.totalorder %v1453_v9, %v1468_v14 }
  0x2e   :  { %v894_v39 = vpack.c.b16 %v772_v34, %v771_v33  ;;  %v788_v40 = vunpack.c.l.b16 %v500_v35  ;;  %v515_v41 = vpack.c.bf16 %v1215_v37, %v1215_v37  ;;  %v516_v42 = vpack.c.bf16 %v1216_v38, %v1216_v38 }
  0x2f   :  { %vm148_vm7 = vcmp.eq.s32.totalorder %v1453_v9, %v1471_v15  ;;  %v1231_v43 = vsel %vm147_vm6, 1.0, %v1408_v18  ;;  %vm97_vm8 = vcmp.eq.s32.totalorder %v1447_v6, %v1474_v16  ;;  %vm98_vm9 = vcmp.eq.s32.totalorder %v1447_v6, %v1477_v17 }
  0x30   :  { %1019 = vmatpush.bf16.msra.mxu0 %v894_v39  ;;  %v902_v44 = vpack.c.b16 %v788_v40, %v787_v36  ;;  %v803_v45 = vunpack.c.l.b16 %v515_v41  ;;  %v804_v46 = vunpack.c.l.b16 %v516_v42  ;;  %v1232_v47 = vsel %vm148_vm7, 1.0, %v1408_v18 }
  0x31   :  { %v531_v48 = vpack.c.bf16 %v1231_v43, %v1231_v43  ;;  %v532_v49 = vpack.c.bf16 %v1232_v47, %v1232_v47  ;;  %v1181_v50 = vsel %vm97_vm8, 1.0, %v1408_v18  ;;  %v1182_v51 = vsel %vm98_vm9, 1.0, %v1408_v18 }
  0x32   :  { %1032 = vmatpush.bf16.msra.mxu1 %v902_v44  ;;  %v910_v52 = vpack.c.b16 %v804_v46, %v803_v45  ;;  %v481_v53 = vpack.c.bf16 %v1181_v50, %v1181_v50  ;;  %v482_v54 = vpack.c.bf16 %v1182_v51, %v1182_v51  ;;  %vm113_vm10 = vcmp.eq.s32.totalorder %v1449_v7, %v1474_v16 }
  0x33   :  { %v819_v55 = vunpack.c.l.b16 %v531_v48  ;;  %v820_v56 = vunpack.c.l.b16 %v532_v49  ;;  %vm114_vm11 = vcmp.eq.s32.totalorder %v1449_v7, %v1477_v17  ;;  %v1197_v57 = vsel %vm113_vm10, 1.0, %v1408_v18 }
  0x34   :  { %1045 = vmatpush.bf16.msra.mxu2 %v910_v52  ;;  %v769_v58 = vunpack.c.l.b16 %v481_v53  ;;  %v770_v59 = vunpack.c.l.b16 %v482_v54  ;;  %v1198_v60 = vsel %vm114_vm11, 1.0, %v1408_v18  ;;  %v497_v61 = vpack.c.bf16 %v1197_v57, %v1197_v57 }
  0x35   :  { %v918_v62 = vpack.c.b16 %v820_v56, %v819_v55  ;;  %v498_v63 = vpack.c.bf16 %v1198_v60, %v1198_v60  ;;  %vm129_vm12 = vcmp.eq.s32.totalorder %v1451_v8, %v1474_v16  ;;  %vm130_vm13 = vcmp.eq.s32.totalorder %v1451_v8, %v1477_v17 }
  0x36   :  { %v893_v1 = vpack.c.b16 %v770_v59, %v769_v58  ;;  %v785_v2 = vunpack.c.l.b16 %v497_v61  ;;  %v1213_v3 = vsel %vm129_vm12, 1.0, %v1408_v18  ;;  %v1214_v4 = vsel %vm130_vm13, 1.0, %v1408_v18 }
  0x37   :  { %1058 = vmatpush.bf16.msra.mxu3 %v918_v62  ;;  %v786_v19 = vunpack.c.l.b16 %v498_v63  ;;  %v513_v20 = vpack.c.bf16 %v1213_v3, %v1213_v3  ;;  %v514_v21 = vpack.c.bf16 %v1214_v4, %v1214_v4  ;;  %vm145_vm14 = vcmp.eq.s32.totalorder %v1453_v9, %v1474_v16 }
  0x38   :  { %1020 = vmatpush.bf16.msra.mxu0 %v893_v1  ;;  %vm146_vm15 = vcmp.eq.s32.totalorder %v1453_v9, %v1477_v17  ;;  %v1229_v22 = vsel %vm145_vm14, 1.0, %v1408_v18  ;;  %v1575_v23 = vadd.s32 48, %v1444_v5  ;;  %v1578_v24 = vadd.s32 56, %v1444_v5 }
  0x39   :  { %v901_v25 = vpack.c.b16 %v786_v19, %v785_v2  ;;  %v801_v26 = vunpack.c.l.b16 %v513_v20  ;;  %v802_v27 = vunpack.c.l.b16 %v514_v21  ;;  %v1230_v28 = vsel %vm146_vm15, 1.0, %v1408_v18 }
  0x3a   :  { %v529_v29 = vpack.c.bf16 %v1229_v22, %v1229_v22  ;;  %v530_v30 = vpack.c.bf16 %v1230_v28, %v1230_v28  ;;  %vm95_vm0 = vcmp.eq.s32.totalorder %v1447_v6, %v1575_v23  ;;  %vm96_vm1 = vcmp.eq.s32.totalorder %v1447_v6, %v1578_v24 }
  0x3b   :  { %1033 = vmatpush.bf16.msra.mxu1 %v901_v25  ;;  %v909_v31 = vpack.c.b16 %v802_v27, %v801_v26  ;;  %v1179_v32 = vsel %vm95_vm0, 1.0, %v1408_v18  ;;  %v1180_v33 = vsel %vm96_vm1, 1.0, %v1408_v18  ;;  %vm111_vm2 = vcmp.eq.s32.totalorder %v1449_v7, %v1575_v23 }
  0x3c   :  { %v817_v34 = vunpack.c.l.b16 %v529_v29  ;;  %v818_v35 = vunpack.c.l.b16 %v530_v30  ;;  %v479_v36 = vpack.c.bf16 %v1179_v32, %v1179_v32  ;;  %v480_v37 = vpack.c.bf16 %v1180_v33, %v1180_v33 }
  0x3d   :  { %1046 = vmatpush.bf16.msra.mxu2 %v909_v31  ;;  %vm112_vm3 = vcmp.eq.s32.totalorder %v1449_v7, %v1578_v24  ;;  %v1195_v38 = vsel %vm111_vm2, 1.0, %v1408_v18  ;;  %vm127_vm4 = vcmp.eq.s32.totalorder %v1451_v8, %v1575_v23  ;;  %vm128_vm5 = vcmp.eq.s32.totalorder %v1451_v8, %v1578_v24 }
  0x3e   :  { %v917_v39 = vpack.c.b16 %v818_v35, %v817_v34  ;;  %v767_v40 = vunpack.c.l.b16 %v479_v36  ;;  %v768_v41 = vunpack.c.l.b16 %v480_v37  ;;  %v1196_v42 = vsel %vm112_vm3, 1.0, %v1408_v18 }
  0x3f   :  { %v495_v43 = vpack.c.bf16 %v1195_v38, %v1195_v38  ;;  %v496_v44 = vpack.c.bf16 %v1196_v42, %v1196_v42  ;;  %v1211_v45 = vsel %vm127_vm4, 1.0, %v1408_v18  ;;  %v1212_v46 = vsel %vm128_vm5, 1.0, %v1408_v18 }
  0x40   :  { %1059 = vmatpush.bf16.msra.mxu3 %v917_v39  ;;  %v892_v47 = vpack.c.b16 %v768_v41, %v767_v40  ;;  %v511_v48 = vpack.c.bf16 %v1211_v45, %v1211_v45  ;;  %v512_v49 = vpack.c.bf16 %v1212_v46, %v1212_v46  ;;  %vm143_vm6 = vcmp.eq.s32.totalorder %v1453_v9, %v1575_v23 }
  0x41   :  { %v783_v50 = vunpack.c.l.b16 %v495_v43  ;;  %v784_v51 = vunpack.c.l.b16 %v496_v44  ;;  %vm144_vm7 = vcmp.eq.s32.totalorder %v1453_v9, %v1578_v24  ;;  %v1227_v52 = vsel %vm143_vm6, 1.0, %v1408_v18 }
  0x42   :  { %1021 = vmatpush.bf16.msra.mxu0 %v892_v47  ;;  %v799_v53 = vunpack.c.l.b16 %v511_v48  ;;  %v800_v54 = vunpack.c.l.b16 %v512_v49  ;;  %v1228_v55 = vsel %vm144_vm7, 1.0, %v1408_v18  ;;  %v527_v56 = vpack.c.bf16 %v1227_v52, %v1227_v52 }
  0x43   :  { %v900_v57 = vpack.c.b16 %v784_v51, %v783_v50  ;;  %v528_v58 = vpack.c.bf16 %v1228_v55, %v1228_v55  ;;  %v1606_v59 = vadd.s32 32, %v1444_v5  ;;  %v1609_v60 = vadd.s32 40, %v1444_v5 }
  0x44   :  { %v908_v61 = vpack.c.b16 %v800_v54, %v799_v53  ;;  %v815_v62 = vunpack.c.l.b16 %v527_v56  ;;  %v1612_v63 = vadd.s32 16, %v1444_v5  ;;  %v1615_v1 = vadd.s32 24, %v1444_v5 }
  0x45   :  { %1034 = vmatpush.bf16.msra.mxu1 %v900_v57  ;;  %v816_v2 = vunpack.c.l.b16 %v528_v58  ;;  %vm93_vm8 = vcmp.eq.s32.totalorder %v1447_v6, %v1606_v59  ;;  %vm94_vm9 = vcmp.eq.s32.totalorder %v1447_v6, %v1609_v60  ;;  %vm109_vm10 = vcmp.eq.s32.totalorder %v1449_v7, %v1606_v59 }
  0x46   :  { %1047 = vmatpush.bf16.msra.mxu2 %v908_v61  ;;  %v1177_v3 = vsel %vm93_vm8, 1.0, %v1408_v18  ;;  %v1178_v4 = vsel %vm94_vm9, 1.0, %v1408_v18  ;;  %vm110_vm11 = vcmp.eq.s32.totalorder %v1449_v7, %v1609_v60  ;;  %v1193_v19 = vsel %vm109_vm10, 1.0, %v1408_v18 }
  0x47   :  { %v916_v20 = vpack.c.b16 %v816_v2, %v815_v62  ;;  %v477_v21 = vpack.c.bf16 %v1177_v3, %v1177_v3  ;;  %v478_v22 = vpack.c.bf16 %v1178_v4, %v1178_v4  ;;  %v1194_v25 = vsel %vm110_vm11, 1.0, %v1408_v18 }
  0x48   :  { %v493_v26 = vpack.c.bf16 %v1193_v19, %v1193_v19  ;;  %v494_v27 = vpack.c.bf16 %v1194_v25, %v1194_v25  ;;  %vm125_vm12 = vcmp.eq.s32.totalorder %v1451_v8, %v1606_v59  ;;  %vm126_vm13 = vcmp.eq.s32.totalorder %v1451_v8, %v1609_v60 }
  0x49   :  { %1060 = vmatpush.bf16.msra.mxu3 %v916_v20  ;;  %v765_v28 = vunpack.c.l.b16 %v477_v21  ;;  %v766_v29 = vunpack.c.l.b16 %v478_v22  ;;  %v1209_v30 = vsel %vm125_vm12, 1.0, %v1408_v18  ;;  %v1210_v31 = vsel %vm126_vm13, 1.0, %v1408_v18 }
  0x4a   :  { %v781_v32 = vunpack.c.l.b16 %v493_v26  ;;  %v782_v33 = vunpack.c.l.b16 %v494_v27  ;;  %v509_v34 = vpack.c.bf16 %v1209_v30, %v1209_v30  ;;  %v510_v35 = vpack.c.bf16 %v1210_v31, %v1210_v31 }
  0x4b   :  { %v891_v36 = vpack.c.b16 %v766_v29, %v765_v28  ;;  %vm141_vm14 = vcmp.eq.s32.totalorder %v1453_v9, %v1606_v59  ;;  %vm142_vm15 = vcmp.eq.s32.totalorder %v1453_v9, %v1609_v60  ;;  %vm91_vm0 = vcmp.eq.s32.totalorder %v1447_v6, %v1612_v63 }
  0x4c   :  { %v899_v37 = vpack.c.b16 %v782_v33, %v781_v32  ;;  %v797_v38 = vunpack.c.l.b16 %v509_v34  ;;  %v798_v39 = vunpack.c.l.b16 %v510_v35  ;;  %v1225_v40 = vsel %vm141_vm14, 1.0, %v1408_v18 }
  0x4d   :  { %1022 = vmatpush.bf16.msra.mxu0 %v891_v36  ;;  %v1226_v41 = vsel %vm142_vm15, 1.0, %v1408_v18  ;;  %v525_v42 = vpack.c.bf16 %v1225_v40, %v1225_v40  ;;  %vm92_vm1 = vcmp.eq.s32.totalorder %v1447_v6, %v1615_v1  ;;  %v1175_v43 = vsel %vm91_vm0, 1.0, %v1408_v18 }
  0x4e   :  { %1035 = vmatpush.bf16.msra.mxu1 %v899_v37  ;;  %v907_v44 = vpack.c.b16 %v798_v39, %v797_v38  ;;  %v526_v45 = vpack.c.bf16 %v1226_v41, %v1226_v41  ;;  %v1176_v46 = vsel %vm92_vm1, 1.0, %v1408_v18  ;;  %v475_v47 = vpack.c.bf16 %v1175_v43, %v1175_v43 }
  0x4f   :  { %v813_v48 = vunpack.c.l.b16 %v525_v42  ;;  %v476_v49 = vpack.c.bf16 %v1176_v46, %v1176_v46  ;;  %vm107_vm2 = vcmp.eq.s32.totalorder %v1449_v7, %v1612_v63  ;;  %vm108_vm3 = vcmp.eq.s32.totalorder %v1449_v7, %v1615_v1 }
  0x50   :  { %1048 = vmatpush.bf16.msra.mxu2 %v907_v44  ;;  %v814_v50 = vunpack.c.l.b16 %v526_v45  ;;  %v763_v51 = vunpack.c.l.b16 %v475_v47  ;;  %v1191_v52 = vsel %vm107_vm2, 1.0, %v1408_v18  ;;  %v1192_v53 = vsel %vm108_vm3, 1.0, %v1408_v18 }
  0x51   :  { %v764_v54 = vunpack.c.l.b16 %v476_v49  ;;  %v491_v55 = vpack.c.bf16 %v1191_v52, %v1191_v52  ;;  %v492_v56 = vpack.c.bf16 %v1192_v53, %v1192_v53  ;;  %vm123_vm4 = vcmp.eq.s32.totalorder %v1451_v8, %v1612_v63  ;;  %v1693_v52 = vld [vmem:[#allocation6 + $0x8] sm:$0xff] }
  0x52   :  { %v915_v57 = vpack.c.b16 %v814_v50, %v813_v48  ;;  %vm124_vm5 = vcmp.eq.s32.totalorder %v1451_v8, %v1615_v1  ;;  %v1207_v58 = vsel %vm123_vm4, 1.0, %v1408_v18  ;;  %vm139_vm6 = vcmp.eq.s32.totalorder %v1453_v9, %v1612_v63 }
  0x53   :  { %v890_v61 = vpack.c.b16 %v764_v54, %v763_v51  ;;  %v779_v62 = vunpack.c.l.b16 %v491_v55  ;;  %v780_v2 = vunpack.c.l.b16 %v492_v56  ;;  %v1208_v3 = vsel %vm124_vm5, 1.0, %v1408_v18 }
  0x54   :  { %1061 = vmatpush.bf16.msra.mxu3 %v915_v57  ;;  %v507_v4 = vpack.c.bf16 %v1207_v58, %v1207_v58  ;;  %v508_v19 = vpack.c.bf16 %v1208_v3, %v1208_v3  ;;  %vm140_vm7 = vcmp.eq.s32.totalorder %v1453_v9, %v1615_v1  ;;  %v1223_v20 = vsel %vm139_vm6, 1.0, %v1408_v18 }
  0x55   :  { %1023 = vmatpush.bf16.msra.mxu0 %v890_v61  ;;  %v898_v21 = vpack.c.b16 %v780_v2, %v779_v62  ;;  %v1224_v22 = vsel %vm140_vm7, 1.0, %v1408_v18  ;;  %v523_v25 = vpack.c.bf16 %v1223_v20, %v1223_v20  ;;  %v1666_v26 = vadd.s32 8, %v1444_v5 }
  0x56   :  { %v795_v27 = vunpack.c.l.b16 %v507_v4  ;;  %v796_v28 = vunpack.c.l.b16 %v508_v19  ;;  %v524_v29 = vpack.c.bf16 %v1224_v22, %v1224_v22  ;;  %vm89_vm8 = vcmp.eq.s32.totalorder %v1447_v6, %v1444_v5 }
  0x57   :  { %1036 = vmatpush.bf16.msra.mxu1 %v898_v21  ;;  %v811_v30 = vunpack.c.l.b16 %v523_v25  ;;  %vm90_vm9 = vcmp.eq.s32.totalorder %v1447_v6, %v1666_v26  ;;  %v1173_v31 = vsel %vm89_vm8, 1.0, %v1408_v18  ;;  %vm105_vm10 = vcmp.eq.s32.totalorder %v1449_v7, %v1444_v5 }
  0x58   :  { %v906_v32 = vpack.c.b16 %v796_v28, %v795_v27  ;;  %v812_v33 = vunpack.c.l.b16 %v524_v29  ;;  %v1174_v34 = vsel %vm90_vm9, 1.0, %v1408_v18  ;;  %v473_v35 = vpack.c.bf16 %v1173_v31, %v1173_v31 }
  0x59   :  { %v474_v36 = vpack.c.bf16 %v1174_v34, %v1174_v34  ;;  %vm106_vm11 = vcmp.eq.s32.totalorder %v1449_v7, %v1666_v26  ;;  %v1189_v37 = vsel %vm105_vm10, 1.0, %v1408_v18  ;;  %vm121_vm12 = vcmp.eq.s32.totalorder %v1451_v8, %v1444_v5 }
  0x5a   :  { %1049 = vmatpush.bf16.msra.mxu2 %v906_v32  ;;  %v914_v6 = vpack.c.b16 %v812_v33, %v811_v30  ;;  %v761_v38 = vunpack.c.l.b16 %v473_v35  ;;  %v1190_v39 = vsel %vm106_vm11, 1.0, %v1408_v18  ;;  %v489_v40 = vpack.c.bf16 %v1189_v37, %v1189_v37 }
  0x5b   :  { %v762_v41 = vunpack.c.l.b16 %v474_v36  ;;  %v490_v42 = vpack.c.bf16 %v1190_v39, %v1190_v39  ;;  %vm122_vm13 = vcmp.eq.s32.totalorder %v1451_v8, %v1666_v26  ;;  %v1205_v43 = vsel %vm121_vm12, 1.0, %v1408_v18 }
  0x5c   :  { %1062 = vmatpush.bf16.msra.mxu3 %v914_v6  ;;  %v777_v7 = vunpack.c.l.b16 %v489_v40  ;;  %v1206_v44 = vsel %vm122_vm13, 1.0, %v1408_v18  ;;  %v505_v45 = vpack.c.bf16 %v1205_v43, %v1205_v43  ;;  %vm137_vm14 = vcmp.eq.s32.totalorder %v1453_v9, %v1444_v5 }
  0x5d   :  { %v889_v46 = vpack.c.b16 %v762_v41, %v761_v38  ;;  %v778_v47 = vunpack.c.l.b16 %v490_v42  ;;  %v506_v48 = vpack.c.bf16 %v1206_v44, %v1206_v44  ;;  %vm138_vm15 = vcmp.eq.s32.totalorder %v1453_v9, %v1666_v26 }
  0x5e   :  { %v793_v49 = vunpack.c.l.b16 %v505_v45  ;;  %v1221_v50 = vsel %vm137_vm14, 1.0, %v1408_v18  ;;  %v1222_v8 = vsel %vm138_vm15, 1.0, %v1408_v18  ;;  %v77_v51 = vrot.slane %v1439_v0, 4 }
  0x5f   :  { %1024 = vmatpush.bf16.msra.mxu0 %v889_v46  ;;  %v897_v53 = vpack.c.b16 %v778_v47, %v777_v7  ;;  %v794_v54 = vunpack.c.l.b16 %v506_v48  ;;  %v521_v55 = vpack.c.bf16 %v1221_v50, %v1221_v50  ;;  %v522_v56 = vpack.c.bf16 %v1222_v8, %v1222_v8 }
  0x60   :  { %v1695_v57 = vperm.slane %v77_v51, 0  ;;  %v78_v58 = vrot.slane %v1439_v0, 5  ;;  %v79_v9 = vrot.slane %v1439_v0, 6  ;;  %v80_v61 = vrot.slane %v1439_v0, 7 }
  0x61   :  { %1037 = vmatpush.bf16.msra.mxu1 %v897_v53  ;;  %v905_v62 = vpack.c.b16 %v794_v54, %v793_v49  ;;  %v809_v2 = vunpack.c.l.b16 %v521_v55  ;;  %v810_v3 = vunpack.c.l.b16 %v522_v56  ;;  %v611_v4 = vunpack.c.l.b16 %v1693_v52 }
  0x62   :  { %vm167_vm0 = vcmp.eq.s32.totalorder %v1695_v57, %v1456_v10  ;;  %vm168_vm1 = vcmp.eq.s32.totalorder %v1695_v57, %v1459_v11  ;;  %v1705_v19 = vperm.slane %v78_v58, 0  ;;  %v1707_v20 = vperm.slane %v79_v9, 0 }
  0x63   :  { %1050 = vmatpush.bf16.msra.mxu2 %v905_v62  ;;  %v913_v21 = vpack.c.b16 %v810_v3, %v809_v2  ;;  %v1251_v0 = vsel %vm167_vm0, 1.0, %v1408_v18  ;;  %v1252_v22 = vsel %vm168_vm1, 1.0, %v1408_v18  ;;  %v1711_v25 = vperm.slane %v80_v61, 0 }
  0x64   :  { %v551_v27 = vpack.c.bf16 %v1251_v0, %v1251_v0  ;;  %v552_v28 = vpack.c.bf16 %v1252_v22, %v1252_v22  ;;  %vm183_vm2 = vcmp.eq.s32.totalorder %v1705_v19, %v1456_v10  ;;  %vm184_vm3 = vcmp.eq.s32.totalorder %v1705_v19, %v1459_v11 }
  0x65   :  { %1063 = vmatpush.bf16.msra.mxu3 %v913_v21  ;;  %v1267_v29 = vsel %vm183_vm2, 1.0, %v1408_v18  ;;  %v1268_v30 = vsel %vm184_vm3, 1.0, %v1408_v18  ;;  %vm199_vm4 = vcmp.eq.s32.totalorder %v1707_v20, %v1456_v10  ;;  %vm200_vm5 = vcmp.eq.s32.totalorder %v1707_v20, %v1459_v11 }
  0x66   :  { %v839_v31 = vunpack.c.l.b16 %v551_v27  ;;  %v840_v32 = vunpack.c.l.b16 %v552_v28  ;;  %v567_v33 = vpack.c.bf16 %v1267_v29, %v1267_v29  ;;  %v568_v34 = vpack.c.bf16 %v1268_v30, %v1268_v30 }
  0x67   :  { %v1283_v35 = vsel %vm199_vm4, 1.0, %v1408_v18  ;;  %v1284_v36 = vsel %vm200_vm5, 1.0, %v1408_v18  ;;  %vm215_vm6 = vcmp.eq.s32.totalorder %v1711_v25, %v1456_v10  ;;  %vm216_vm7 = vcmp.eq.s32.totalorder %v1711_v25, %v1459_v11 }
  0x68   :  { %v928_v37 = vpack.c.b16 %v840_v32, %v839_v31  ;;  %v855_v6 = vunpack.c.l.b16 %v567_v33  ;;  %v856_v38 = vunpack.c.l.b16 %v568_v34  ;;  %v583_v39 = vpack.c.bf16 %v1283_v35, %v1283_v35 }
  0x69   :  { %v584_v40 = vpack.c.bf16 %v1284_v36, %v1284_v36  ;;  %v1299_v41 = vsel %vm215_vm6, 1.0, %v1408_v18  ;;  %v1300_v42 = vsel %vm216_vm7, 1.0, %v1408_v18  ;;  %vm165_vm8 = vcmp.eq.s32.totalorder %v1695_v57, %v1462_v12 }
  0x6a   :  { %1069 = vmatpush.bf16.msrb.mxu0 %v928_v37  ;;  %v936_v43 = vpack.c.b16 %v856_v38, %v855_v6  ;;  %v871_v7 = vunpack.c.l.b16 %v583_v39  ;;  %v599_v44 = vpack.c.bf16 %v1299_v41, %v1299_v41  ;;  %v600_v10 = vpack.c.bf16 %v1300_v42, %v1300_v42 }
  0x6b   :  { %v872_v45 = vunpack.c.l.b16 %v584_v40  ;;  %vm166_vm9 = vcmp.eq.s32.totalorder %v1695_v57, %v1465_v13  ;;  %v1249_v11 = vsel %vm165_vm8, 1.0, %v1408_v18  ;;  %vm181_vm10 = vcmp.eq.s32.totalorder %v1705_v19, %v1462_v12 }
  0x6c   :  { %1082 = vmatpush.bf16.msrb.mxu1 %v936_v43  ;;  %v887_v46 = vunpack.c.l.b16 %v599_v44  ;;  %v888_v47 = vunpack.c.l.b16 %v600_v10  ;;  %v1250_v48 = vsel %vm166_vm9, 1.0, %v1408_v18  ;;  %v549_v49 = vpack.c.bf16 %v1249_v11, %v1249_v11  ;;  %v601_v10 = vld [vmem:[#allocation6] sm:$0xff] }
  0x6d   :  { %v944_v50 = vpack.c.b16 %v872_v45, %v871_v7  ;;  %v550_v8 = vpack.c.bf16 %v1250_v48, %v1250_v48  ;;  %vm182_vm11 = vcmp.eq.s32.totalorder %v1705_v19, %v1465_v13  ;;  %v1265_v51 = vsel %vm181_vm10, 1.0, %v1408_v18 }
  0x6e   :  { %v952_v53 = vpack.c.b16 %v888_v47, %v887_v46  ;;  %v837_v54 = vunpack.c.l.b16 %v549_v49  ;;  %v1266_v55 = vsel %vm182_vm11, 1.0, %v1408_v18  ;;  %v565_v56 = vpack.c.bf16 %v1265_v51, %v1265_v51 }
  0x6f   :  { %1095 = vmatpush.bf16.msrb.mxu2 %v944_v50  ;;  %v838_v58 = vunpack.c.l.b16 %v550_v8  ;;  %v566_v9 = vpack.c.bf16 %v1266_v55, %v1266_v55  ;;  %vm197_vm12 = vcmp.eq.s32.totalorder %v1707_v20, %v1462_v12  ;;  %vm198_vm13 = vcmp.eq.s32.totalorder %v1707_v20, %v1465_v13 }
  0x70   :  { %1108 = vmatpush.bf16.msrb.mxu3 %v952_v53  ;;  %v853_v61 = vunpack.c.l.b16 %v565_v56  ;;  %v1281_v62 = vsel %vm197_vm12, 1.0, %v1408_v18  ;;  %v1282_v2 = vsel %vm198_vm13, 1.0, %v1408_v18  ;;  %vm213_vm14 = vcmp.eq.s32.totalorder %v1711_v25, %v1462_v12 }
  0x71   :  { %v927_v3 = vpack.c.b16 %v838_v58, %v837_v54  ;;  %v854_v21 = vunpack.c.l.b16 %v566_v9  ;;  %v581_v0 = vpack.c.bf16 %v1281_v62, %v1281_v62  ;;  %v582_v22 = vpack.c.bf16 %v1282_v2, %v1282_v2 }
  0x72   :  { %vm214_vm15 = vcmp.eq.s32.totalorder %v1711_v25, %v1465_v13  ;;  %v1297_v27 = vsel %vm213_vm14, 1.0, %v1408_v18  ;;  %v619_v28 = vpack.c.b16 %v611_v4, %v611_v4  ;;  %vm163_vm0 = vcmp.eq.s32.totalorder %v1695_v57, %v1468_v14 }
  0x73   :  { %1070 = vmatpush.bf16.msrb.mxu0 %v927_v3  ;;  %v935_v29 = vpack.c.b16 %v854_v21, %v853_v61  ;;  %v869_v30 = vunpack.c.l.b16 %v581_v0  ;;  %v870_v12 = vunpack.c.l.b16 %v582_v22  ;;  %v1298_v31 = vsel %vm214_vm15, 1.0, %v1408_v18 }
  0x74   :  { %v597_v32 = vpack.c.bf16 %v1297_v27, %v1297_v27  ;;  %v598_v33 = vpack.c.bf16 %v1298_v31, %v1298_v31  ;;  %1051 = vmatmul.bf16.vlgmr.msra.gmra.mxu2 %v619_v28  ;;  %vm164_vm1 = vcmp.eq.s32.totalorder %v1695_v57, %v1471_v15  ;;  %v1247_v13 = vsel %vm163_vm0, 1.0, %v1408_v18 }
  0x75   :  { %1083 = vmatpush.bf16.msrb.mxu1 %v935_v29  ;;  %v943_v34 = vpack.c.b16 %v870_v12, %v869_v30  ;;  %v1248_v4 = vsel %vm164_vm1, 1.0, %v1408_v18  ;;  %v547_v35 = vpack.c.bf16 %v1247_v13, %v1247_v13  ;;  %vm179_vm2 = vcmp.eq.s32.totalorder %v1705_v19, %v1468_v14 }
  0x76   :  { %v885_v36 = vunpack.c.l.b16 %v597_v32  ;;  %v886_v37 = vunpack.c.l.b16 %v598_v33  ;;  %v548_v6 = vpack.c.bf16 %v1248_v4, %v1248_v4  ;;  %vm180_vm3 = vcmp.eq.s32.totalorder %v1705_v19, %v1471_v15 }
  0x77   :  { %1096 = vmatpush.bf16.msrb.mxu2 %v943_v34  ;;  %v835_v38 = vunpack.c.l.b16 %v547_v35  ;;  %v1263_v39 = vsel %vm179_vm2, 1.0, %v1408_v18  ;;  %v1264_v40 = vsel %vm180_vm3, 1.0, %v1408_v18  ;;  %vm195_vm4 = vcmp.eq.s32.totalorder %v1707_v20, %v1468_v14 }
  0x78   :  { %v951_v41 = vpack.c.b16 %v886_v37, %v885_v36  ;;  %v836_v42 = vunpack.c.l.b16 %v548_v6  ;;  %v563_v43 = vpack.c.bf16 %v1263_v39, %v1263_v39  ;;  %v564_v7 = vpack.c.bf16 %v1264_v40, %v1264_v40 }
  0x79   :  { %vm196_vm5 = vcmp.eq.s32.totalorder %v1707_v20, %v1471_v15  ;;  %v1279_v44 = vsel %vm195_vm4, 1.0, %v1408_v18  ;;  %vm211_vm6 = vcmp.eq.s32.totalorder %v1711_v25, %v1468_v14  ;;  %vm212_vm7 = vcmp.eq.s32.totalorder %v1711_v25, %v1471_v15 }
  0x7a   :  { %1109 = vmatpush.bf16.msrb.mxu3 %v951_v41  ;;  %v926_v45 = vpack.c.b16 %v836_v42, %v835_v38  ;;  %v851_v11 = vunpack.c.l.b16 %v563_v43  ;;  %v852_v46 = vunpack.c.l.b16 %v564_v7  ;;  %v1280_v47 = vsel %vm196_vm5, 1.0, %v1408_v18 }
  0x7b   :  { %v579_v48 = vpack.c.bf16 %v1279_v44, %v1279_v44  ;;  %v580_v49 = vpack.c.bf16 %v1280_v47, %v1280_v47  ;;  %v1295_v50 = vsel %vm211_vm6, 1.0, %v1408_v18  ;;  %v1296_v8 = vsel %vm212_vm7, 1.0, %v1408_v18 }
  0x7c   :  { %1071 = vmatpush.bf16.msrb.mxu0 %v926_v45  ;;  %v934_v51 = vpack.c.b16 %v852_v46, %v851_v11  ;;  %v595_v53 = vpack.c.bf16 %v1295_v50, %v1295_v50  ;;  %v596_v14 = vpack.c.bf16 %v1296_v8, %v1296_v8  ;;  %v609_v54 = vunpack.c.l.b16 %v601_v10 }
  0x7d   :  { %v867_v55 = vunpack.c.l.b16 %v579_v48  ;;  %v868_v15 = vunpack.c.l.b16 %v580_v49  ;;  %v612_v56 = vunpack.c.h.b16 %v1693_v52  ;;  %v610_v58 = vunpack.c.h.b16 %v601_v10 }
  0x7e   :  { %1084 = vmatpush.bf16.msrb.mxu1 %v934_v51  ;;  %v883_v9 = vunpack.c.l.b16 %v595_v53  ;;  %v884_v61 = vunpack.c.l.b16 %v596_v14  ;;  %v617_v62 = vpack.c.b16 %v609_v54, %v609_v54  ;;  %vm161_vm8 = vcmp.eq.s32.totalorder %v1695_v57, %v1474_v16 }
  0x7f   :  { %v942_v2 = vpack.c.b16 %v868_v15, %v867_v55  ;;  %v620_v3 = vpack.c.b16 %v612_v56, %v612_v56  ;;  %v618_v21 = vpack.c.b16 %v610_v58, %v610_v58  ;;  %vm162_vm9 = vcmp.eq.s32.totalorder %v1695_v57, %v1477_v17 }
  0x80   :  { %v950_v0 = vpack.c.b16 %v884_v61, %v883_v9  ;;  %1025 = vmatmul.bf16.vlgmr.msra.gmra.mxu0 %v617_v62  ;;  %v1245_v22 = vsel %vm161_vm8, 1.0, %v1408_v18  ;;  %v1246_v52 = vsel %vm162_vm9, 1.0, %v1408_v18  ;;  %vm177_vm10 = vcmp.eq.s32.totalorder %v1705_v19, %v1474_v16 }
  0x81   :  { %1097 = vmatpush.bf16.msrb.mxu2 %v942_v2  ;;  %1064 = vmatmul.bf16.vlgmr.msra.gmra.mxu3 %v620_v3  ;;  %v545_v27 = vpack.c.bf16 %v1245_v22, %v1245_v22  ;;  %v546_v28 = vpack.c.bf16 %v1246_v52, %v1246_v52  ;;  %vm178_vm11 = vcmp.eq.s32.totalorder %v1705_v19, %v1477_v17  ;;  %v1261_v29 = vsel %vm177_vm10, 1.0, %v1408_v18 }
  0x82   :  { %1110 = vmatpush.bf16.msrb.mxu3 %v950_v0  ;;  %1038 = vmatmul.bf16.vlgmr.msra.gmra.mxu1 %v618_v21  ;;  %v1262_v30 = vsel %vm178_vm11, 1.0, %v1408_v18  ;;  %v561_v12 = vpack.c.bf16 %v1261_v29, %v1261_v29  ;;  %vm193_vm12 = vcmp.eq.s32.totalorder %v1707_v20, %v1474_v16  ;;  %vm194_vm13 = vcmp.eq.s32.totalorder %v1707_v20, %v1477_v17 }
  0x83   :  { %v833_v31 = vunpack.c.l.b16 %v545_v27  ;;  %v834_v32 = vunpack.c.l.b16 %v546_v28  ;;  %v562_v33 = vpack.c.bf16 %v1262_v30, %v1262_v30  ;;  %v1277_v13 = vsel %vm193_vm12, 1.0, %v1408_v18 }
  0x84   :  { %v849_v34 = vunpack.c.l.b16 %v561_v12  ;;  %v1278_v4 = vsel %vm194_vm13, 1.0, %v1408_v18  ;;  %v577_v35 = vpack.c.bf16 %v1277_v13, %v1277_v13  ;;  %vm209_vm14 = vcmp.eq.s32.totalorder %v1711_v25, %v1474_v16 }
  0x85   :  { %v925_v36 = vpack.c.b16 %v834_v32, %v833_v31  ;;  %v850_v37 = vunpack.c.l.b16 %v562_v33  ;;  %v578_v6 = vpack.c.bf16 %v1278_v4, %v1278_v4  ;;  %vm210_vm15 = vcmp.eq.s32.totalorder %v1711_v25, %v1477_v17 }
  0x86   :  { %v865_v38 = vunpack.c.l.b16 %v577_v35  ;;  %v1293_v39 = vsel %vm209_vm14, 1.0, %v1408_v18  ;;  %v1294_v40 = vsel %vm210_vm15, 1.0, %v1408_v18  ;;  %vm159_vm0 = vcmp.eq.s32.totalorder %v1695_v57, %v1575_v23 }
  0x87   :  { %1072 = vmatpush.bf16.msrb.mxu0 %v925_v36  ;;  %v933_v41 = vpack.c.b16 %v850_v37, %v849_v34  ;;  %v866_v42 = vunpack.c.l.b16 %v578_v6  ;;  %v593_v43 = vpack.c.bf16 %v1293_v39, %v1293_v39  ;;  %v594_v7 = vpack.c.bf16 %v1294_v40, %v1294_v40 }
  0x88   :  { %vm160_vm1 = vcmp.eq.s32.totalorder %v1695_v57, %v1578_v24  ;;  %v1243_v16 = vsel %vm159_vm0, 1.0, %v1408_v18  ;;  %vm175_vm2 = vcmp.eq.s32.totalorder %v1705_v19, %v1575_v23  ;;  %vm176_vm3 = vcmp.eq.s32.totalorder %v1705_v19, %v1578_v24 }
  0x89   :  { %1085 = vmatpush.bf16.msrb.mxu1 %v933_v41  ;;  %v941_v17 = vpack.c.b16 %v866_v42, %v865_v38  ;;  %v881_v44 = vunpack.c.l.b16 %v593_v43  ;;  %v882_v10 = vunpack.c.l.b16 %v594_v7  ;;  %v1244_v45 = vsel %vm160_vm1, 1.0, %v1408_v18 }
  0x8a   :  { %v543_v11 = vpack.c.bf16 %v1243_v16, %v1243_v16  ;;  %v544_v46 = vpack.c.bf16 %v1244_v45, %v1244_v45  ;;  %v1259_v47 = vsel %vm175_vm2, 1.0, %v1408_v18  ;;  %v1260_v48 = vsel %vm176_vm3, 1.0, %v1408_v18 }
  0x8b   :  { %1098 = vmatpush.bf16.msrb.mxu2 %v941_v17  ;;  %v949_v49 = vpack.c.b16 %v882_v10, %v881_v44  ;;  %v559_v50 = vpack.c.bf16 %v1259_v47, %v1259_v47  ;;  %v560_v8 = vpack.c.bf16 %v1260_v48, %v1260_v48  ;;  %vm191_vm4 = vcmp.eq.s32.totalorder %v1707_v20, %v1575_v23 }
  0x8c   :  { %v831_v51 = vunpack.c.l.b16 %v543_v11  ;;  %v832_v53 = vunpack.c.l.b16 %v544_v46  ;;  %vm192_vm5 = vcmp.eq.s32.totalorder %v1707_v20, %v1578_v24  ;;  %v1275_v14 = vsel %vm191_vm4, 1.0, %v1408_v18 }
  0x8d   :  { %1111 = vmatpush.bf16.msrb.mxu3 %v949_v49  ;;  %v847_v54 = vunpack.c.l.b16 %v559_v50  ;;  %v848_v55 = vunpack.c.l.b16 %v560_v8  ;;  %v1276_v15 = vsel %vm192_vm5, 1.0, %v1408_v18  ;;  %v575_v56 = vpack.c.bf16 %v1275_v14, %v1275_v14 }
  0x8e   :  { %v924_v58 = vpack.c.b16 %v832_v53, %v831_v51  ;;  %v576_v9 = vpack.c.bf16 %v1276_v15, %v1276_v15  ;;  %vm207_vm6 = vcmp.eq.s32.totalorder %v1711_v25, %v1575_v23  ;;  %vm208_vm7 = vcmp.eq.s32.totalorder %v1711_v25, %v1578_v24 }
  0x8f   :  { %v932_v61 = vpack.c.b16 %v848_v55, %v847_v54  ;;  %v863_v62 = vunpack.c.l.b16 %v575_v56  ;;  %v1291_v2 = vsel %vm207_vm6, 1.0, %v1408_v18  ;;  %v1292_v3 = vsel %vm208_vm7, 1.0, %v1408_v18 }
  0x90   :  { %1073 = vmatpush.bf16.msrb.mxu0 %v924_v58  ;;  %v864_v21 = vunpack.c.l.b16 %v576_v9  ;;  %v591_v0 = vpack.c.bf16 %v1291_v2, %v1291_v2  ;;  %v592_v22 = vpack.c.bf16 %v1292_v3, %v1292_v3  ;;  %vm157_vm8 = vcmp.eq.s32.totalorder %v1695_v57, %v1606_v59 }
  0x91   :  { %1086 = vmatpush.bf16.msrb.mxu1 %v932_v61  ;;  %vm158_vm9 = vcmp.eq.s32.totalorder %v1695_v57, %v1609_v60  ;;  %v1241_v23 = vsel %vm157_vm8, 1.0, %v1408_v18  ;;  %vm173_vm10 = vcmp.eq.s32.totalorder %v1705_v19, %v1606_v59  ;;  %vm174_vm11 = vcmp.eq.s32.totalorder %v1705_v19, %v1609_v60 }
  0x92   :  { %v940_v24 = vpack.c.b16 %v864_v21, %v863_v62  ;;  %v879_v52 = vunpack.c.l.b16 %v591_v0  ;;  %v880_v27 = vunpack.c.l.b16 %v592_v22  ;;  %v1242_v28 = vsel %vm158_vm9, 1.0, %v1408_v18 }
  0x93   :  { %v541_v29 = vpack.c.bf16 %v1241_v23, %v1241_v23  ;;  %v542_v30 = vpack.c.bf16 %v1242_v28, %v1242_v28  ;;  %v1257_v12 = vsel %vm173_vm10, 1.0, %v1408_v18  ;;  %v1258_v31 = vsel %vm174_vm11, 1.0, %v1408_v18 }
  0x94   :  { %1099 = vmatpush.bf16.msrb.mxu2 %v940_v24  ;;  %v948_v32 = vpack.c.b16 %v880_v27, %v879_v52  ;;  %v557_v33 = vpack.c.bf16 %v1257_v12, %v1257_v12  ;;  %v558_v13 = vpack.c.bf16 %v1258_v31, %v1258_v31  ;;  %vm189_vm12 = vcmp.eq.s32.totalorder %v1707_v20, %v1606_v59 }
  0x95   :  { %v829_v34 = vunpack.c.l.b16 %v541_v29  ;;  %v830_v4 = vunpack.c.l.b16 %v542_v30  ;;  %vm190_vm13 = vcmp.eq.s32.totalorder %v1707_v20, %v1609_v60  ;;  %v1273_v35 = vsel %vm189_vm12, 1.0, %v1408_v18 }
  0x96   :  { %1112 = vmatpush.bf16.msrb.mxu3 %v948_v32  ;;  %v845_v36 = vunpack.c.l.b16 %v557_v33  ;;  %v846_v37 = vunpack.c.l.b16 %v558_v13  ;;  %v1274_v6 = vsel %vm190_vm13, 1.0, %v1408_v18  ;;  %v573_v38 = vpack.c.bf16 %v1273_v35, %v1273_v35 }
  0x97   :  { %v923_v39 = vpack.c.b16 %v830_v4, %v829_v34  ;;  %v574_v40 = vpack.c.bf16 %v1274_v6, %v1274_v6  ;;  %vm205_vm14 = vcmp.eq.s32.totalorder %v1711_v25, %v1606_v59  ;;  %vm206_vm15 = vcmp.eq.s32.totalorder %v1711_v25, %v1609_v60 }
  0x98   :  { %v931_v41 = vpack.c.b16 %v846_v37, %v845_v36  ;;  %v861_v42 = vunpack.c.l.b16 %v573_v38  ;;  %v1289_v43 = vsel %vm205_vm14, 1.0, %v1408_v18  ;;  %v1290_v7 = vsel %vm206_vm15, 1.0, %v1408_v18  ;;  %v603_v37 = vld [vmem:[#allocation6 + $0x10] sm:$0xff] }
  0x99   :  { %1074 = vmatpush.bf16.msrb.mxu0 %v923_v39  ;;  %v862_v16 = vunpack.c.l.b16 %v574_v40  ;;  %v589_v17 = vpack.c.bf16 %v1289_v43, %v1289_v43  ;;  %v590_v44 = vpack.c.bf16 %v1290_v7, %v1290_v7  ;;  %vm155_vm0 = vcmp.eq.s32.totalorder %v1695_v57, %v1612_v63  ;;  %v604_v39 = vld [vmem:[#allocation6 + $0x18] sm:$0xff] }
  0x9a   :  { %1087 = vmatpush.bf16.msrb.mxu1 %v931_v41  ;;  %vm156_vm1 = vcmp.eq.s32.totalorder %v1695_v57, %v1615_v1  ;;  %v1239_v59 = vsel %vm155_vm0, 1.0, %v1408_v18  ;;  %vm171_vm2 = vcmp.eq.s32.totalorder %v1705_v19, %v1612_v63  ;;  %vm172_vm3 = vcmp.eq.s32.totalorder %v1705_v19, %v1615_v1 }
  0x9b   :  { %v939_v60 = vpack.c.b16 %v862_v16, %v861_v42  ;;  %v877_v10 = vunpack.c.l.b16 %v589_v17  ;;  %v878_v45 = vunpack.c.l.b16 %v590_v44  ;;  %v1240_v11 = vsel %vm156_vm1, 1.0, %v1408_v18 }
  0x9c   :  { %v539_v46 = vpack.c.bf16 %v1239_v59, %v1239_v59  ;;  %v540_v47 = vpack.c.bf16 %v1240_v11, %v1240_v11  ;;  %v1255_v48 = vsel %vm171_vm2, 1.0, %v1408_v18  ;;  %v1256_v49 = vsel %vm172_vm3, 1.0, %v1408_v18 }
  0x9d   :  { %1100 = vmatpush.bf16.msrb.mxu2 %v939_v60  ;;  %v947_v50 = vpack.c.b16 %v878_v45, %v877_v10  ;;  %v555_v8 = vpack.c.bf16 %v1255_v48, %v1255_v48  ;;  %v556_v51 = vpack.c.bf16 %v1256_v49, %v1256_v49  ;;  %vm187_vm4 = vcmp.eq.s32.totalorder %v1707_v20, %v1612_v63 }
  0x9e   :  { %v827_v53 = vunpack.c.l.b16 %v539_v46  ;;  %v828_v14 = vunpack.c.l.b16 %v540_v47  ;;  %vm188_vm5 = vcmp.eq.s32.totalorder %v1707_v20, %v1615_v1  ;;  %v1271_v54 = vsel %vm187_vm4, 1.0, %v1408_v18 }
  0x9f   :  { %1113 = vmatpush.bf16.msrb.mxu3 %v947_v50  ;;  %v843_v55 = vunpack.c.l.b16 %v555_v8  ;;  %v844_v15 = vunpack.c.l.b16 %v556_v51  ;;  %v1272_v56 = vsel %vm188_vm5, 1.0, %v1408_v18  ;;  %v571_v58 = vpack.c.bf16 %v1271_v54, %v1271_v54 }
  0xa0   :  { %v922_v9 = vpack.c.b16 %v828_v14, %v827_v53  ;;  %v572_v61 = vpack.c.bf16 %v1272_v56, %v1272_v56  ;;  %vm203_vm6 = vcmp.eq.s32.totalorder %v1711_v25, %v1612_v63  ;;  %vm204_vm7 = vcmp.eq.s32.totalorder %v1711_v25, %v1615_v1 }
  0xa1   :  { %v930_v62 = vpack.c.b16 %v844_v15, %v843_v55  ;;  %v859_v2 = vunpack.c.l.b16 %v571_v58  ;;  %v1287_v3 = vsel %vm203_vm6, 1.0, %v1408_v18  ;;  %v1288_v21 = vsel %vm204_vm7, 1.0, %v1408_v18 }
  0xa2   :  { %1075 = vmatpush.bf16.msrb.mxu0 %v922_v9  ;;  %v860_v0 = vunpack.c.l.b16 %v572_v61  ;;  %v587_v22 = vpack.c.bf16 %v1287_v3, %v1287_v3  ;;  %v588_v23 = vpack.c.bf16 %v1288_v21, %v1288_v21  ;;  %vm153_vm8 = vcmp.eq.s32.totalorder %v1695_v57, %v1444_v5 }
  0xa3   :  { %1088 = vmatpush.bf16.msrb.mxu1 %v930_v62  ;;  %vm154_vm9 = vcmp.eq.s32.totalorder %v1695_v57, %v1666_v26  ;;  %v1237_v63 = vsel %vm153_vm8, 1.0, %v1408_v18  ;;  %vm169_vm10 = vcmp.eq.s32.totalorder %v1705_v19, %v1444_v5  ;;  %vm170_vm11 = vcmp.eq.s32.totalorder %v1705_v19, %v1666_v26 }
  0xa4   :  { %v938_v1 = vpack.c.b16 %v860_v0, %v859_v2  ;;  %v875_v24 = vunpack.c.l.b16 %v587_v22  ;;  %v876_v52 = vunpack.c.l.b16 %v588_v23  ;;  %v1238_v27 = vsel %vm154_vm9, 1.0, %v1408_v18 }
  0xa5   :  { %v537_v28 = vpack.c.bf16 %v1237_v63, %v1237_v63  ;;  %v538_v29 = vpack.c.bf16 %v1238_v27, %v1238_v27  ;;  %v1253_v30 = vsel %vm169_vm10, 1.0, %v1408_v18  ;;  %v1254_v12 = vsel %vm170_vm11, 1.0, %v1408_v18 }
  0xa6   :  { %1101 = vmatpush.bf16.msrb.mxu2 %v938_v1  ;;  %v946_v57 = vpack.c.b16 %v876_v52, %v875_v24  ;;  %v553_v31 = vpack.c.bf16 %v1253_v30, %v1253_v30  ;;  %v554_v32 = vpack.c.bf16 %v1254_v12, %v1254_v12  ;;  %vm185_vm12 = vcmp.eq.s32.totalorder %v1707_v20, %v1444_v5 }
  0xa7   :  { %v825_v33 = vunpack.c.l.b16 %v537_v28  ;;  %v826_v19 = vunpack.c.l.b16 %v538_v29  ;;  %vm186_vm13 = vcmp.eq.s32.totalorder %v1707_v20, %v1666_v26  ;;  %v1269_v13 = vsel %vm185_vm12, 1.0, %v1408_v18 }
  0xa8   :  { %1114 = vmatpush.bf16.msrb.mxu3 %v946_v57  ;;  %v841_v34 = vunpack.c.l.b16 %v553_v31  ;;  %v842_v4 = vunpack.c.l.b16 %v554_v32  ;;  %v1270_v35 = vsel %vm186_vm13, 1.0, %v1408_v18  ;;  %v569_v36 = vpack.c.bf16 %v1269_v13, %v1269_v13 }
  0xa9   :  { %v921_v6 = vpack.c.b16 %v826_v19, %v825_v33  ;;  %v570_v38 = vpack.c.bf16 %v1270_v35, %v1270_v35  ;;  %vm201_vm14 = vcmp.eq.s32.totalorder %v1711_v25, %v1444_v5  ;;  %vm202_vm15 = vcmp.eq.s32.totalorder %v1711_v25, %v1666_v26 }
  0xaa   :  { %v929_v40 = vpack.c.b16 %v842_v4, %v841_v34  ;;  %v857_v20 = vunpack.c.l.b16 %v569_v36  ;;  %v1285_v41 = vsel %vm201_vm14, 1.0, %v1408_v18  ;;  %v1286_v42 = vsel %vm202_vm15, 1.0, %v1408_v18 }
  0xab   :  { %1076 = vmatpush.bf16.msrb.mxu0 %v921_v6  ;;  %v858_v43 = vunpack.c.l.b16 %v570_v38  ;;  %v585_v7 = vpack.c.bf16 %v1285_v41, %v1285_v41  ;;  %v586_v16 = vpack.c.bf16 %v1286_v42, %v1286_v42  ;;  %v613_v17 = vunpack.c.l.b16 %v603_v37 }
  0xac   :  { %1089 = vmatpush.bf16.msrb.mxu1 %v929_v40  ;;  %v614_v44 = vunpack.c.h.b16 %v603_v37  ;;  %v615_v59 = vunpack.c.l.b16 %v604_v39  ;;  %v616_v60 = vunpack.c.h.b16 %v604_v39  ;;  %v1125_v22 = vstv %s1301_s1 }
  0xad   :  { %v937_v5 = vpack.c.b16 %v858_v43, %v857_v20  ;;  %v873_v10 = vunpack.c.l.b16 %v585_v7  ;;  %v874_v45 = vunpack.c.l.b16 %v586_v16  ;;  %v621_v26 = vpack.c.b16 %v613_v17, %v613_v17 }
  0xae   :  { %v622_v25 = vpack.c.b16 %v614_v44, %v614_v44  ;;  %v623_v11 = vpack.c.b16 %v615_v59, %v615_v59  ;;  %v624_v18 = vpack.c.b16 %v616_v60, %v616_v60  ;;  %v1122_v63 = vstv %s1121_s2 }
  0xaf   :  { %1102 = vmatpush.bf16.msrb.mxu2 %v937_v5  ;;  %v945_v46 = vpack.c.b16 %v874_v45, %v873_v10  ;;  %1077 = vmatmul.bf16.vlgmr.msrb.gmra.mxu0 %v621_v26 }
  0xb0   :  { %1090 = vmatmul.bf16.vlgmr.msrb.gmra.mxu1 %v622_v25 }
  0xb1   :  { %1115 = vmatpush.bf16.msrb.mxu3 %v945_v46 }
  0xb2   :  { %1103 = vmatmul.bf16.vlgmr.msrb.gmra.mxu2 %v623_v11 }
  0xb4   :  { %1116 = vmatmul.bf16.vlgmr.msrb.gmra.mxu3 %v624_v18 }
  0xf7   :  { %v1052_v47 = vpop.f32.mrf.mxu2 }
  0xfd   :  { %v1026_v48 = vpop.f32.mrf.mxu0 }
  0xff   :  { %v1039_v49 = vpop.f32.mrf.mxu1  ;;  %v1054_v50 = vpop.f32.mrf.mxu2 }
 0x100   :  { %v1040_v54 = vadd.f32 %v1039_v49, %v1026_v48 }
 0x102   :  { %v1053_v55 = vadd.f32 %v1052_v47, %v1040_v54 }
 0x104   :  { %v1065_v8 = vpop.f32.mrf.mxu3 }
 0x105   :  { %v1028_v51 = vpop.f32.mrf.mxu0  ;;  %v1066_v58 = vadd.f32 %v1065_v8, %v1053_v55 }
 0x107   :  { %v1041_v53 = vpop.f32.mrf.mxu1 }
 0x10c   :  { %v1067_v14 = vpop.f32.mrf.mxu3 }
 0x12c   :  { %v1078_v15 = vpop.f32.mrf.mxu0 }
 0x12d   :  { %v1091_v56 = vpop.f32.mrf.mxu1  ;;  %v1079_v9 = vadd.f32 %v1078_v15, %v1066_v58 }
 0x12f   :  { %v1092_v61 = vadd.f32 %v1091_v56, %v1079_v9 }
 0x134   :  { %v1080_v62 = vpop.f32.mrf.mxu0 }
 0x135   :  { %v1104_v2 = vpop.f32.mrf.mxu2  ;;  %v1093_v3 = vpop.f32.mrf.mxu1 }
 0x136   :  { %v1105_v21 = vadd.f32 %v1104_v2, %v1092_v61 }
 0x137   :  { %v1117_v0 = vpop.f32.mrf.mxu3 }
 0x138   :  { %v1118_v23 = vadd.f32 %v1117_v0, %v1105_v21 }
 0x13a   :  { %v1126_v1 = vadd.f32 %v1125_v22, %v1118_v23  ;;  %v1123_v24 = vadd.f32 %v1122_v63, %v1118_v23 }
 0x13c   :  { %v1128_v52 = vrot.slane %v1126_v1, 1 }
 0x13d   :  { %v1106_v27 = vpop.f32.mrf.mxu2 }
 0x13e   :  { %v1130_v28 = vmax.f32 %v1123_v24, %v1128_v52 }
 0x13f   :  { %v1119_v29 = vpop.f32.mrf.mxu3 }
 0x140   :  { %v1131_v30 = vsub.f32 %v1123_v24, %v1130_v28  ;;  %v1135_v12 = vrot.slane %v1130_v28, 7 }
 0x142   :  { %v1137_v57 = vsub.f32 %v1126_v1, %v1135_v12  ;;  %v1132_v31 = vmul.f32 1.442695, %v1131_v30 }
 0x144   :  { %v1138_v32 = vmul.f32 1.442695, %v1137_v57 }
 0x146   :  { %1307 = vpow2.f32 %v1138_v32 }
 0x147   :  { %1309 = vpow2.f32 %v1132_v31 }
 0x14c   :  { %v1308_v33 = vpop.eup %1307 }
 0x14d   :  { %v1141_v19 = vrot.slane %v1308_v33, 1  ;;  %v1310_v13 = vpop.eup %1309 }
 0x14f   :  { %v1143_v34 = vadd.f32 %v1310_v13, %v1141_v19 }
 0x151   :  { %1311 = vlog2.f32 %v1143_v34 }
 0x157   :  { %v1312_v4 = vpop.eup %1311 }
 0x158   :  { %v1145_v35 = vmul.f32 0.6931472, %v1312_v4 }
 0x15a   :  { %v1146_v36 = vadd.f32 %v1145_v35, %v1130_v28 }
 0x15c   :  { %v1147_v37 = vsub.f32 %v1123_v24, %v1146_v36  ;;  %v1150_v6 = vrot.slane %v1146_v36, 7 }
 0x15e   :  { %1148 = vst [vmem:[#allocation9] sm:$0x1] %v1147_v37  ;;  %v1152_v38 = vsub.f32 %v1126_v1, %v1150_v6 }
 0x160   :  { %1153 = vst [vmem:[#allocation9] sm:$0x2] %v1152_v38 }
 0x161   :  { %1164 = dma.vmem_to_hbm [thread:$0]  %s1160_s26, 32, %s1162_s29, [#allocation4]  }
 0x162   :  { %1403 = dma.done.wait [#allocation4], 32  }
 0x163   :  { %1404 = vsyncadd [#allocation4], 4294967264 }
 0x164   :  { %1169 = vsyncpa [#allocation3], 1 }
 0x165   :  { %1170 = vsyncpa [#allocation7], 1 }
 0x166   :  { %1171 = vsyncpa [#allocation4], 1 }
 0x167   :  { %1172 = vsyncpa [#allocation5], 1 }

</bundles_post_ra>
